<compile_context>
chip_gen: v5e
topology: v5e:2x2
jax: 0.10.0
libtpu: 0.0.40
codegen_flags: <defaults>
</compile_context>

<pallas_src>
import jax
import jax.numpy as jnp
import numpy as np
from jax import lax
from jax.experimental import pallas as pl
from jax.experimental.pallas import tpu as pltpu

EPS = 1e-5  # nn.BatchNorm3d default


# ----------------------------- Pallas kernels -------------------------------
def _conv_stats_kernel(p_ref, w_ref, out_ref, sum_ref, sq_ref):
    """Pass A: conv-as-matmul for one M-tile + per-tile channel sum / sum-sq.

    p_ref  : (tm, K)  bf16 im2col patches
    w_ref  : (K, C)   bf16 reshaped conv weight (constant block, fetched once)
    out_ref: (tm, C)  f32 conv output tile (pre-BN)
    sum_ref: (1,1,C)  f32 per-tile channel sum
    sq_ref : (1,1,C)  f32 per-tile channel sum of squares
    """
    acc = jnp.dot(p_ref[...], w_ref[...], preferred_element_type=jnp.float32)
    out_ref[...] = acc
    sum_ref[...] = jnp.sum(acc, axis=0, keepdims=True).reshape(1, 1, -1)
    sq_ref[...] = jnp.sum(acc * acc, axis=0, keepdims=True).reshape(1, 1, -1)


def _bn_relu_kernel(y_ref, scale_ref, shift_ref, out_ref):
    """Pass B (no residual): y*scale + shift -> ReLU."""
    out_ref[...] = jnp.maximum(
        y_ref[...] * scale_ref[...] + shift_ref[...], 0.0)


def _bn_res_relu_kernel(y_ref, scale_ref, shift_ref, res_ref, out_ref):
    """Pass B (with residual): y*scale + shift + res -> ReLU."""
    out_ref[...] = jnp.maximum(
        y_ref[...] * scale_ref[...] + shift_ref[...] + res_ref[...], 0.0)


# ------------------------------- helpers -------------------------------------
def _round_up(x, m):
    return (x + m - 1) // m * m


def _pick_tile_m(M, K, C):
    """Largest M-tile (multiple of 8, capped at 256) whose double-buffered
    working set (bf16 patches + f32 conv-out + f32 residual) stays well inside
    the scoped VMEM budget on every TPU generation (v7x: 64 MiB physical)."""
    budget = 4 * 1024 * 1024
    per_row = 2 * (2 * K + 4 * C + 4 * C)  # x2 for double buffering
    cap = min(256, max(8, budget // max(per_row, 1)))
    cap = max(8, (cap // 8) * 8)
    for tm in range(cap, 7, -8):
        if M % tm == 0:
            return tm
    return cap  # M gets zero-padded up to a multiple of cap


def _im2col_3d(x):
    """x: (N, D, H, W, C) -> (N*D*H*W, 27*C) for k=3, stride=1, pad=1."""
    N, D, H, W, C = x.shape
    xp = jnp.pad(x, ((0, 0), (1, 1), (1, 1), (1, 1), (0, 0)))
    cols = [xp[:, kd:kd + D, kh:kh + H, kw:kw + W, :]
            for kd in range(3) for kh in range(3) for kw in range(3)]
    patches = jnp.stack(cols, axis=4)            # (N, D, H, W, 27, C)
    return patches.reshape(N * D * H * W, 27 * C)


def _weight_to_mat(w):
    """PyTorch Conv3d weight (Cout, Cin, kD, kH, kW) -> (27*Cin, Cout)."""
    cout, cin = w.shape[0], w.shape[1]
    return jnp.transpose(w, (2, 3, 4, 1, 0)).reshape(27 * cin, cout)


# ------------------------------ one stage -------------------------------------
def _conv_bn_act(x_nd, w, gamma, beta, residual=None):
    """conv3x3x3 + BN(train batch stats) [+ residual] + ReLU.

    x_nd: (N, D, H, W, Cin) f32.  Returns (N, D, H, W, Cout) f32.
    Conv bias is intentionally omitted: it cancels exactly under training-mode
    BatchNorm (batch-mean subtraction).
    """
    N, D, H, W, Cin = x_nd.shape
    Cout = w.shape[0]
    M = N * D * H * W
    K = 27 * Cin

    patches = _im2col_3d(x_nd.astype(jnp.bfloat16))          # (M, K) bf16
    w_mat = _weight_to_mat(w).astype(jnp.bfloat16)           # (K, Cout) bf16

    tm = _pick_tile_m(M, K, Cout)
    Mp = _round_up(M, tm)
    if Mp != M:
        # zero rows contribute exactly 0 to sum/sum-sq (no bias) -> stats stay
        # exact because we divide by the true M below.
        patches = jnp.pad(patches, ((0, Mp - M), (0, 0)))
    nt = Mp // tm

    # ---- Pass A: tiled matmul + per-tile channel statistics -----------------
    conv_out, psum, psq = pl.pallas_call(
        _conv_stats_kernel,
        out_shape=(jax.ShapeDtypeStruct((Mp, Cout), jnp.float32),
                   jax.ShapeDtypeStruct((nt, 1, Cout), jnp.float32),
                   jax.ShapeDtypeStruct((nt, 1, Cout), jnp.float32)),
        grid=(nt,),
        in_specs=[pl.BlockSpec((tm, K), lambda i: (i, 0)),
                  pl.BlockSpec((K, Cout), lambda i: (0, 0))],
        out_specs=(pl.BlockSpec((tm, Cout), lambda i: (i, 0)),
                   pl.BlockSpec((1, 1, Cout), lambda i: (i, 0, 0)),
                   pl.BlockSpec((1, 1, Cout), lambda i: (i, 0, 0))),
        compiler_params=pltpu.CompilerParams(
            dimension_semantics=("parallel",)),
    )(patches, w_mat)

    # ---- tiny (1,C) combine in glue: fold BN into one scale + shift ---------
    mean = jnp.sum(psum[:, 0, :], axis=0) / M                # (C,) true-M mean
    var = jnp.sum(psq[:, 0, :], axis=0) / M - mean * mean    # biased var
    scale = gamma * lax.rsqrt(var + EPS)
    shift = beta - mean * scale
    scale2 = scale.reshape(1, Cout).astype(jnp.float32)
    shift2 = shift.reshape(1, Cout).astype(jnp.float32)

    # ---- Pass B: tiled normalize (+ residual) + ReLU -------------------------
    if residual is None:
        out = pl.pallas_call(
            _bn_relu_kernel,
            out_shape=jax.ShapeDtypeStruct((Mp, Cout), jnp.float32),
            grid=(nt,),
            in_specs=[pl.BlockSpec((tm, Cout), lambda i: (i, 0)),
                      pl.BlockSpec((1, Cout), lambda i: (0, 0)),
                      pl.BlockSpec((1, Cout), lambda i: (0, 0))],
            out_specs=pl.BlockSpec((tm, Cout), lambda i: (i, 0)),
            compiler_params=pltpu.CompilerParams(
                dimension_semantics=("parallel",)),
        )(conv_out, scale2, shift2)
    else:
        res = residual.reshape(M, Cout).astype(jnp.float32)
        if Mp != M:
            res = jnp.pad(res, ((0, Mp - M), (0, 0)))
        out = pl.pallas_call(
            _bn_res_relu_kernel,
            out_shape=jax.ShapeDtypeStruct((Mp, Cout), jnp.float32),
            grid=(nt,),
            in_specs=[pl.BlockSpec((tm, Cout), lambda i: (i, 0)),
                      pl.BlockSpec((1, Cout), lambda i: (0, 0)),
                      pl.BlockSpec((1, Cout), lambda i: (0, 0)),
                      pl.BlockSpec((tm, Cout), lambda i: (i, 0))],
            out_specs=pl.BlockSpec((tm, Cout), lambda i: (i, 0)),
            compiler_params=pltpu.CompilerParams(
                dimension_semantics=("parallel",)),
        )(conv_out, scale2, shift2, res)

    return out[:M].reshape(N, D, H, W, Cout)


# ------------------------------ full forward ---------------------------------
def basic_block_forward(x_ncdhw, params):
    """BasicBlock.forward; x: (N, C, D, H, W) f32, downsample=None."""
    x = jnp.transpose(x_ncdhw, (0, 2, 3, 4, 1)).astype(jnp.float32)  # NDHWC
    Cin = x.shape[-1]
    Cout = params["w1"].shape[0]
    assert Cin == Cout, "downsample is None -> in_channel must equal out_channel"

    # conv biases b1/b2 are unused in the kernel path: they cancel exactly
    # under training-mode BatchNorm (batch-mean subtraction).
    out1 = _conv_bn_act(x, params["w1"], params["g1"], params["beta1"],
                        residual=None)
    out2 = _conv_bn_act(out1, params["w2"], params["g2"], params["beta2"],
                        residual=x)
    return jnp.transpose(out2, (0, 4, 1, 2, 3))  # back to NCDHW


# --------------------------- pure-JAX reference -------------------------------
def _ref_conv3d(x_ncdhw, w, b):
    out = lax.conv_general_dilated(
        x_ncdhw, w, window_strides=(1, 1, 1), padding=[(1, 1)] * 3,
        dimension_numbers=("NCDHW", "OIDHW", "NCDHW"))
    return out + b.reshape(1, -1, 1, 1, 1)


def _ref_bn_train(x, gamma, beta):
    mean = jnp.mean(x, axis=(0, 2, 3, 4), keepdims=True)
    var = jnp.mean(jnp.square(x - mean), axis=(0, 2, 3, 4), keepdims=True)
    return (x - mean) * lax.rsqrt(var + EPS) * gamma.reshape(1, -1, 1, 1, 1) \
        + beta.reshape(1, -1, 1, 1, 1)


def basic_block_reference(x, params):
    out = _ref_conv3d(x, params["w1"], params["b1"])
    out = jnp.maximum(_ref_bn_train(out, params["g1"], params["beta1"]), 0.0)
    out = _ref_conv3d(out, params["w2"], params["b2"])
    out = _ref_bn_train(out, params["g2"], params["beta2"])
    return jnp.maximum(out + x, 0.0)


# ---------------------------------- main --------------------------------------
if __name__ == "__main__":
    key = jax.random.PRNGKey(0)
    k_x, k_w1, k_b1, k_w2, k_b2 = jax.random.split(key, 5)

    N, C, D, H, W = 2, 4, 4, 8, 8          # in_channel == out_channel == 4
    fan_in = C * 27
    bound = 1.0 / np.sqrt(fan_in)

    params = {
        # conv1 / bn1: PyTorch default init
        "w1": jax.random.uniform(k_w1, (C, C, 3, 3, 3), jnp.float32,
                                 -bound, bound),
        "b1": jax.random.uniform(k_b1, (C,), jnp.float32, -bound, bound),
        "g1": jnp.ones((C,), jnp.float32),
        "beta1": jnp.zeros((C,), jnp.float32),
        # init_weight(): conv2 weight/bias zeroed, bn2 gamma=1 beta=0
        "w2": jnp.zeros((C, C, 3, 3, 3), jnp.float32),
        "b2": jnp.zeros((C,), jnp.float32),
        "g2": jnp.ones((C,), jnp.float32),
        "beta2": jnp.zeros((C,), jnp.float32),
    }

    x = jax.random.normal(k_x, (N, C, D, H, W), jnp.float32)

    fwd = jax.jit(basic_block_forward)

    out = jax.block_until_ready(fwd(x, params))
    ref = jax.block_until_ready(basic_block_reference(x, params))
    assert out.shape == (N, C, D, H, W)
    assert bool(jnp.all(jnp.isfinite(out)))
    np.testing.assert_allclose(np.asarray(out), np.asarray(ref),
                               rtol=1e-2, atol=1e-2)

    # Stronger self-check: random conv2/bias2 so stage 2 actually exercises the
    # fused bf16 matmul + BN + residual path (module init zeroes conv2, which
    # would otherwise hide kernel bugs). Slightly looser tol for bf16 operands.
    params_rand = dict(params)
    params_rand["w2"] = jax.random.uniform(k_w2, (C, C, 3, 3, 3), jnp.float32,
                                           -bound, bound)
    params_rand["b2"] = jax.random.uniform(k_b2, (C,), jnp.float32,
                                           -bound, bound)
    out_r = jax.block_until_ready(fwd(x, params_rand))
    ref_r = jax.block_until_ready(basic_block_reference(x, params_rand))
    np.testing.assert_allclose(np.asarray(out_r), np.asarray(ref_r),
                               rtol=2e-2, atol=2e-2)

    print("KERNEL_OK")
</pallas_src>

<mosaic_0001>
module attributes {stable_mosaic.version = 11 : i64} {
  func.func @_conv_stats_kernel(%arg0: i32, %arg1: memref<256x108xbf16, #tpu.memory_space<vmem>>, %arg2: memref<108x4xbf16, #tpu.memory_space<vmem>>, %arg3: memref<256x4xf32, #tpu.memory_space<vmem>>, %arg4: memref<1x1x4xf32, #tpu.memory_space<vmem>>, %arg5: memref<1x1x4xf32, #tpu.memory_space<vmem>>) attributes {dimension_semantics = [#tpu.dimension_semantics<parallel>], iteration_bounds = array<i64: 2>, scalar_prefetch = 0 : i64, scratch_operands = 0 : i64, tpu.core_type = #tpu.core_type<tc>, window_params = [{transform_indices = @transform_0, window_bounds = array<i64: 256, 108>}, {pipeline_mode = #tpu.pipeline_mode<synchronous>, transform_indices = @transform_1, window_bounds = array<i64: 108, 4>}, {transform_indices = @transform_2, window_bounds = array<i64: 256, 4>}, {transform_indices = @transform_3, window_bounds = array<i64: 1, 1, 4>}, {transform_indices = @transform_4, window_bounds = array<i64: 1, 1, 4>}]} {
    %c0 = arith.constant 0 : index
    %c0_0 = arith.constant 0 : index
    %0 = vector.load %arg1[%c0, %c0_0] : memref<256x108xbf16, #tpu.memory_space<vmem>>, vector<256x108xbf16>
    %c0_1 = arith.constant 0 : index
    %c0_2 = arith.constant 0 : index
    %1 = vector.load %arg2[%c0_1, %c0_2] : memref<108x4xbf16, #tpu.memory_space<vmem>>, vector<108x4xbf16>
    %cst = arith.constant dense<0.000000e+00> : vector<256x4xf32>
    %2 = tpu.matmul %0, %1, %cst {dimension_numbers = #tpu.dot_dimension_numbers<[1], [0], [0], [1], [0, 0, 1, 1], [], []>} : vector<256x108xbf16>, vector<108x4xbf16>, vector<256x4xf32> -> vector<256x4xf32>
    %c0_3 = arith.constant 0 : index
    %c0_4 = arith.constant 0 : index
    %3 = vector.load %arg3[%c0_3, %c0_4] : memref<256x4xf32, #tpu.memory_space<vmem>>, vector<256x4xf32>
    tpu.vector_store %arg3[%c0_3, %c0_4], %2 {strides = array<i32>} : memref<256x4xf32, #tpu.memory_space<vmem>>, vector<256x4xf32>,
    %cst_5 = arith.constant dense<0.000000e+00> : vector<4xf32>
    %4 = vector.multi_reduction <add>, %2, %cst_5 [0] : vector<256x4xf32> to vector<4xf32>
    %5 = vector.shape_cast %4 : vector<4xf32> to vector<1x4xf32>
    %6 = vector.shape_cast %5 : vector<1x4xf32> to vector<1x1x4xf32>
    %c0_6 = arith.constant 0 : index
    %c0_7 = arith.constant 0 : index
    %c0_8 = arith.constant 0 : index
    %7 = vector.load %arg4[%c0_6, %c0_7, %c0_8] : memref<1x1x4xf32, #tpu.memory_space<vmem>>, vector<1x1x4xf32>
    tpu.vector_store %arg4[%c0_6, %c0_7, %c0_8], %6 {strides = array<i32>} : memref<1x1x4xf32, #tpu.memory_space<vmem>>, vector<1x1x4xf32>,
    %8 = arith.mulf %2, %2 : vector<256x4xf32>
    %cst_9 = arith.constant dense<0.000000e+00> : vector<4xf32>
    %9 = vector.multi_reduction <add>, %8, %cst_9 [0] : vector<256x4xf32> to vector<4xf32>
    %10 = vector.shape_cast %9 : vector<4xf32> to vector<1x4xf32>
    %11 = vector.shape_cast %10 : vector<1x4xf32> to vector<1x1x4xf32>
    %c0_10 = arith.constant 0 : index
    %c0_11 = arith.constant 0 : index
    %c0_12 = arith.constant 0 : index
    %12 = vector.load %arg5[%c0_10, %c0_11, %c0_12] : memref<1x1x4xf32, #tpu.memory_space<vmem>>, vector<1x1x4xf32>
    tpu.vector_store %arg5[%c0_10, %c0_11, %c0_12], %11 {strides = array<i32>} : memref<1x1x4xf32, #tpu.memory_space<vmem>>, vector<1x1x4xf32>,
    return
  }
  func.func @transform_0(%arg0: i32) -> (i32, i32) {
    %c0_i32 = arith.constant 0 : i32
    %c0_i32_0 = arith.constant 0 : i32
    return %arg0, %c0_i32 : i32, i32
  }
  func.func @transform_1(%arg0: i32) -> (i32, i32) {
    %c0_i32 = arith.constant 0 : i32
    %c0_i32_0 = arith.constant 0 : i32
    %c0_i32_1 = arith.constant 0 : i32
    return %c0_i32, %c0_i32_0 : i32, i32
  }
  func.func @transform_2(%arg0: i32) -> (i32, i32) {
    %c0_i32 = arith.constant 0 : i32
    %c0_i32_0 = arith.constant 0 : i32
    return %arg0, %c0_i32 : i32, i32
  }
  func.func @transform_3(%arg0: i32) -> (i32, i32, i32) {
    %c0_i32 = arith.constant 0 : i32
    %c0_i32_0 = arith.constant 0 : i32
    %c0_i32_1 = arith.constant 0 : i32
    return %arg0, %c0_i32, %c0_i32_0 : i32, i32, i32
  }
  func.func @transform_4(%arg0: i32) -> (i32, i32, i32) {
    %c0_i32 = arith.constant 0 : i32
    %c0_i32_0 = arith.constant 0 : i32
    %c0_i32_1 = arith.constant 0 : i32
    return %arg0, %c0_i32, %c0_i32_0 : i32, i32, i32
  }
}

module attributes {stable_mosaic.version = 11 : i64} {
  func.func @_bn_relu_kernel(%arg0: i32, %arg1: memref<256x4xf32, #tpu.memory_space<vmem>>, %arg2: memref<1x4xf32, #tpu.memory_space<vmem>>, %arg3: memref<1x4xf32, #tpu.memory_space<vmem>>, %arg4: memref<256x4xf32, #tpu.memory_space<vmem>>) attributes {dimension_semantics = [#tpu.dimension_semantics<parallel>], iteration_bounds = array<i64: 2>, scalar_prefetch = 0 : i64, scratch_operands = 0 : i64, tpu.core_type = #tpu.core_type<tc>, window_params = [{transform_indices = @transform_0, window_bounds = array<i64: 256, 4>}, {pipeline_mode = #tpu.pipeline_mode<synchronous>, transform_indices = @transform_1, window_bounds = array<i64: 1, 4>}, {pipeline_mode = #tpu.pipeline_mode<synchronous>, transform_indices = @transform_2, window_bounds = array<i64: 1, 4>}, {transform_indices = @transform_3, window_bounds = array<i64: 256, 4>}]} {
    %c0 = arith.constant 0 : index
    %c0_0 = arith.constant 0 : index
    %0 = vector.load %arg1[%c0, %c0_0] : memref<256x4xf32, #tpu.memory_space<vmem>>, vector<256x4xf32>
    %c0_1 = arith.constant 0 : index
    %c0_2 = arith.constant 0 : index
    %1 = vector.load %arg2[%c0_1, %c0_2] : memref<1x4xf32, #tpu.memory_space<vmem>>, vector<1x4xf32>
    %2 = vector.broadcast %1 : vector<1x4xf32> to vector<256x4xf32>
    %3 = arith.mulf %0, %2 : vector<256x4xf32>
    %c0_3 = arith.constant 0 : index
    %c0_4 = arith.constant 0 : index
    %4 = vector.load %arg3[%c0_3, %c0_4] : memref<1x4xf32, #tpu.memory_space<vmem>>, vector<1x4xf32>
    %5 = vector.broadcast %4 : vector<1x4xf32> to vector<256x4xf32>
    %6 = arith.addf %3, %5 : vector<256x4xf32>
    %cst = arith.constant 0.000000e+00 : f32
    %7 = vector.broadcast %cst : f32 to vector<256x4xf32>
    %8 = arith.maximumf %6, %7 : vector<256x4xf32>
    %c0_5 = arith.constant 0 : index
    %c0_6 = arith.constant 0 : index
    %9 = vector.load %arg4[%c0_5, %c0_6] : memref<256x4xf32, #tpu.memory_space<vmem>>, vector<256x4xf32>
    tpu.vector_store %arg4[%c0_5, %c0_6], %8 {strides = array<i32>} : memref<256x4xf32, #tpu.memory_space<vmem>>, vector<256x4xf32>,
    return
  }
  func.func @transform_0(%arg0: i32) -> (i32, i32) {
    %c0_i32 = arith.constant 0 : i32
    %c0_i32_0 = arith.constant 0 : i32
    return %arg0, %c0_i32 : i32, i32
  }
  func.func @transform_1(%arg0: i32) -> (i32, i32) {
    %c0_i32 = arith.constant 0 : i32
    %c0_i32_0 = arith.constant 0 : i32
    %c0_i32_1 = arith.constant 0 : i32
    return %c0_i32, %c0_i32_0 : i32, i32
  }
  func.func @transform_2(%arg0: i32) -> (i32, i32) {
    %c0_i32 = arith.constant 0 : i32
    %c0_i32_0 = arith.constant 0 : i32
    %c0_i32_1 = arith.constant 0 : i32
    return %c0_i32, %c0_i32_0 : i32, i32
  }
  func.func @transform_3(%arg0: i32) -> (i32, i32) {
    %c0_i32 = arith.constant 0 : i32
    %c0_i32_0 = arith.constant 0 : i32
    return %arg0, %c0_i32 : i32, i32
  }
}

module attributes {stable_mosaic.version = 11 : i64} {
  func.func @_bn_res_relu_kernel(%arg0: i32, %arg1: memref<256x4xf32, #tpu.memory_space<vmem>>, %arg2: memref<1x4xf32, #tpu.memory_space<vmem>>, %arg3: memref<1x4xf32, #tpu.memory_space<vmem>>, %arg4: memref<256x4xf32, #tpu.memory_space<vmem>>, %arg5: memref<256x4xf32, #tpu.memory_space<vmem>>) attributes {dimension_semantics = [#tpu.dimension_semantics<parallel>], iteration_bounds = array<i64: 2>, scalar_prefetch = 0 : i64, scratch_operands = 0 : i64, tpu.core_type = #tpu.core_type<tc>, window_params = [{transform_indices = @transform_0, window_bounds = array<i64: 256, 4>}, {pipeline_mode = #tpu.pipeline_mode<synchronous>, transform_indices = @transform_1, window_bounds = array<i64: 1, 4>}, {pipeline_mode = #tpu.pipeline_mode<synchronous>, transform_indices = @transform_2, window_bounds = array<i64: 1, 4>}, {transform_indices = @transform_3, window_bounds = array<i64: 256, 4>}, {transform_indices = @transform_4, window_bounds = array<i64: 256, 4>}]} {
    %c0 = arith.constant 0 : index
    %c0_0 = arith.constant 0 : index
    %0 = vector.load %arg1[%c0, %c0_0] : memref<256x4xf32, #tpu.memory_space<vmem>>, vector<256x4xf32>
    %c0_1 = arith.constant 0 : index
    %c0_2 = arith.constant 0 : index
    %1 = vector.load %arg2[%c0_1, %c0_2] : memref<1x4xf32, #tpu.memory_space<vmem>>, vector<1x4xf32>
    %2 = vector.broadcast %1 : vector<1x4xf32> to vector<256x4xf32>
    %3 = arith.mulf %0, %2 : vector<256x4xf32>
    %c0_3 = arith.constant 0 : index
    %c0_4 = arith.constant 0 : index
    %4 = vector.load %arg3[%c0_3, %c0_4] : memref<1x4xf32, #tpu.memory_space<vmem>>, vector<1x4xf32>
    %5 = vector.broadcast %4 : vector<1x4xf32> to vector<256x4xf32>
    %6 = arith.addf %3, %5 : vector<256x4xf32>
    %c0_5 = arith.constant 0 : index
    %c0_6 = arith.constant 0 : index
    %7 = vector.load %arg4[%c0_5, %c0_6] : memref<256x4xf32, #tpu.memory_space<vmem>>, vector<256x4xf32>
    %8 = arith.addf %6, %7 : vector<256x4xf32>
    %cst = arith.constant 0.000000e+00 : f32
    %9 = vector.broadcast %cst : f32 to vector<256x4xf32>
    %10 = arith.maximumf %8, %9 : vector<256x4xf32>
    %c0_7 = arith.constant 0 : index
    %c0_8 = arith.constant 0 : index
    %11 = vector.load %arg5[%c0_7, %c0_8] : memref<256x4xf32, #tpu.memory_space<vmem>>, vector<256x4xf32>
    tpu.vector_store %arg5[%c0_7, %c0_8], %10 {strides = array<i32>} : memref<256x4xf32, #tpu.memory_space<vmem>>, vector<256x4xf32>,
    return
  }
  func.func @transform_0(%arg0: i32) -> (i32, i32) {
    %c0_i32 = arith.constant 0 : i32
    %c0_i32_0 = arith.constant 0 : i32
    return %arg0, %c0_i32 : i32, i32
  }
  func.func @transform_1(%arg0: i32) -> (i32, i32) {
    %c0_i32 = arith.constant 0 : i32
    %c0_i32_0 = arith.constant 0 : i32
    %c0_i32_1 = arith.constant 0 : i32
    return %c0_i32, %c0_i32_0 : i32, i32
  }
  func.func @transform_2(%arg0: i32) -> (i32, i32) {
    %c0_i32 = arith.constant 0 : i32
    %c0_i32_0 = arith.constant 0 : i32
    %c0_i32_1 = arith.constant 0 : i32
    return %c0_i32, %c0_i32_0 : i32, i32
  }
  func.func @transform_3(%arg0: i32) -> (i32, i32) {
    %c0_i32 = arith.constant 0 : i32
    %c0_i32_0 = arith.constant 0 : i32
    return %arg0, %c0_i32 : i32, i32
  }
  func.func @transform_4(%arg0: i32) -> (i32, i32) {
    %c0_i32 = arith.constant 0 : i32
    %c0_i32_0 = arith.constant 0 : i32
    return %arg0, %c0_i32 : i32, i32
  }
}

</mosaic_0001>

<bundles_post_ra>
// kernel: basic_block_forward.5
= control target key start
LH: loop header
LB: loop body
LE: loop exit
PB: predicated region body
PF: predicated region fallthrough
CT: control target
= control target key end

     0   :  { %s448_s12 = smov 0   ;;  %s639_s0 = inlined_call_operand.vmem [shape: f32[512,4], index: 0, kind: input, shape index: {}]   ;;  %s640_s1 = inlined_call_operand.vmem [shape: f32[1,4], index: 1, kind: input, shape index: {}]   ;;  %s641_s2 = inlined_call_operand.vmem [shape: f32[1,4], index: 2, kind: input, shape index: {}]   ;;  %s642_s3 = inlined_call_operand.vmem [shape: f32[512,4], index: 3, kind: output, shape index: {}]  }
   0x1 LB: > { %s399_s13 = sadd.s32 4294967295, %s426_s12   ;;  %p403_p0 = scmp.ge.s32.totalorder %s426_s12, 1  ;;  %s426_s12 = sphi %s448_s12, %s13_s12  }
   0x2   : > { %p138_p1 = scmp.lt.s32.totalorder %s426_s12, 3 }
   0x4   : > { %p139_p2 = pnand %p403_p0, %p138_p1 }
   0x5   : > { %s404_s14 = sshll.u32 (!%p139_p2), %s399_s13, 5 }
   0x6   : > { %142 = sbr.rel (%p139_p2) target bundleno = 53 (0x35), region = 32  ;;  %p163_p3 = scmp.lt.s32.totalorder (!%p139_p2), %s404_s14, 63 }
   0xb   : > { %s644_s14 = smov (!%p163_p3, %s404_s14), 63  ;;  %v459_v0 = vld [vmem:[%s640_s1] ss:$0 sm:$0xff]  ;;  %vm310_vm0 = vcmask 31744  }
   0xc   : > { %s405_s17 = sshll.u32 %s644_s14, 3  ;;  %v469_v1 = vld [vmem:[%s641_s2] ss:$0 sm:$0xff] }
   0xd   : > { %s464_s20 = scalar_lea.vmem %s639_s0, %s405_s17  ;;  %s492_s25 = scalar_lea.vmem %s642_s3, %s405_s17 }
   0xe   : > { %v174_v2 = vld [vmem:[%s464_s20] sm:$0xff]  ;;  %v175_v3 = vld [vmem:[%s464_s20 + $0x8] sm:$0xff]  ;;  %v176_v4 = vld [vmem:[%s464_s20 + $0x10] sm:$0xff] }
   0xf   : > { %v210_v5 = vmul.f32 %v459_v0, %v174_v2  ;;  %v211_v6 = vmul.f32 %v459_v0, %v175_v3  ;;  %v212_v7 = vmul.f32 %v459_v0, %v176_v4  ;;  %v177_v8 = vld [vmem:[%s464_s20 + $0x18] sm:$0xff]  ;;  %v178_v9 = vld [vmem:[%s464_s20 + $0x20] sm:$0xff]  ;;  %v179_v10 = vld [vmem:[%s464_s20 + $0x28] sm:$0xff] }
  0x10   : > { %v213_v11 = vmul.f32 %v459_v0, %v177_v8  ;;  %v214_v12 = vmul.f32 %v459_v0, %v178_v9  ;;  %v215_v13 = vmul.f32 %v459_v0, %v179_v10  ;;  %v180_v14 = vld [vmem:[%s464_s20 + $0x30] sm:$0xff]  ;;  %v181_v15 = vld [vmem:[%s464_s20 + $0x38] sm:$0xff]  ;;  %v182_v24 = vld [vmem:[%s464_s20 + $0x40] sm:$0xff] }
  0x11   : > { %v246_v16 = vadd.f32 %v469_v1, %v210_v5  ;;  %v247_v17 = vadd.f32 %v469_v1, %v211_v6  ;;  %v248_v18 = vadd.f32 %v469_v1, %v212_v7  ;;  %v216_v19 = vmul.f32 %v459_v0, %v180_v14  ;;  %v183_v25 = vld [vmem:[%s464_s20 + $0x48] sm:$0xff]  ;;  %v184_v26 = vld [vmem:[%s464_s20 + $0x50] sm:$0xff]  ;;  %v185_v31 = vld [vmem:[%s464_s20 + $0x58] sm:$0xff] }
  0x12   : > { %v249_v20 = vadd.f32 %v469_v1, %v213_v11  ;;  %v250_v21 = vadd.f32 %v469_v1, %v214_v12  ;;  %v251_v22 = vadd.f32 %v469_v1, %v215_v13  ;;  %v217_v23 = vmul.f32 %v459_v0, %v181_v15  ;;  %v186_v32 = vld [vmem:[%s464_s20 + $0x60] sm:$0xff]  ;;  %v187_v33 = vld [vmem:[%s464_s20 + $0x68] sm:$0xff]  ;;  %v188_v37 = vld [vmem:[%s464_s20 + $0x70] sm:$0xff] }
  0x13   : > { %v278_v27 = vmax.f32 %v246_v16, 0.0  ;;  %v279_v28 = vmax.f32 %v247_v17, 0.0  ;;  %v280_v29 = vmax.f32 %v248_v18, 0.0  ;;  %v252_v30 = vadd.f32 %v469_v1, %v216_v19  ;;  %v189_v42 = vld [vmem:[%s464_s20 + $0x78] sm:$0xff]  ;;  %v190_v54 = vld [vmem:[%s464_s20 + $0x80] sm:$0xff]  ;;  %v191_v55 = vld [vmem:[%s464_s20 + $0x88] sm:$0xff] }
  0x14   : > { %v281_v34 = vmax.f32 %v249_v20, 0.0  ;;  %v282_v35 = vmax.f32 %v250_v21, 0.0  ;;  %v253_v36 = vadd.f32 %v469_v1, %v217_v23  ;;  %v283_v38 = vmax.f32 %v251_v22, 0.0  ;;  %v192_v56 = vld [vmem:[%s464_s20 + $0x90] sm:$0xff]  ;;  %v193_v59 = vld [vmem:[%s464_s20 + $0x98] sm:$0xff]  ;;  %v194_v63 = vld [vmem:[%s464_s20 + $0xa0] sm:$0xff] }
  0x15   : > { %311 = vst.msk [vmem:[%s492_s25] sm:$0xff] %vm310_vm0, %v278_v27  ;;  %v218_v39 = vmul.f32 %v459_v0, %v182_v24  ;;  %v219_v40 = vmul.f32 %v459_v0, %v183_v25  ;;  %v220_v41 = vmul.f32 %v459_v0, %v184_v26  ;;  %v284_v43 = vmax.f32 %v252_v30, 0.0  ;;  %v195_v6 = vld [vmem:[%s464_s20 + $0xa8] sm:$0xff]  ;;  %v196_v10 = vld [vmem:[%s464_s20 + $0xb0] sm:$0xff]  ;;  %v197_v14 = vld [vmem:[%s464_s20 + $0xb8] sm:$0xff] }
  0x16   : > { %312 = vst.msk [vmem:[%s492_s25 + $0x8] sm:$0xff] %vm310_vm0, %v279_v28  ;;  %v221_v44 = vmul.f32 %v459_v0, %v185_v31  ;;  %v222_v45 = vmul.f32 %v459_v0, %v186_v32  ;;  %v223_v46 = vmul.f32 %v459_v0, %v187_v33  ;;  %v224_v50 = vmul.f32 %v459_v0, %v188_v37  ;;  %v198_v18 = vld [vmem:[%s464_s20 + $0xc0] sm:$0xff]  ;;  %v199_v22 = vld [vmem:[%s464_s20 + $0xc8] sm:$0xff]  ;;  %v200_v26 = vld [vmem:[%s464_s20 + $0xd0] sm:$0xff] }
  0x17   : > { %313 = vst.msk [vmem:[%s492_s25 + $0x10] sm:$0xff] %vm310_vm0, %v280_v29  ;;  %v254_v47 = vadd.f32 %v469_v1, %v218_v39  ;;  %v255_v48 = vadd.f32 %v469_v1, %v219_v40  ;;  %v256_v49 = vadd.f32 %v469_v1, %v220_v41  ;;  %v285_v51 = vmax.f32 %v253_v36, 0.0  ;;  %v201_v30 = vld [vmem:[%s464_s20 + $0xd8] sm:$0xff] }
  0x18   : > { %314 = vst.msk [vmem:[%s492_s25 + $0x18] sm:$0xff] %vm310_vm0, %v281_v34  ;;  %v257_v52 = vadd.f32 %v469_v1, %v221_v44  ;;  %v225_v53 = vmul.f32 %v459_v0, %v189_v42  ;;  %v258_v58 = vadd.f32 %v469_v1, %v222_v45  ;;  %v259_v62 = vadd.f32 %v469_v1, %v223_v46  ;;  %v202_v34 = vld [vmem:[%s464_s20 + $0xe0] sm:$0xff]  ;;  %v204_v42 = vld [vmem:[%s464_s20 + $0xf0] sm:$0xff]  ;;  %v205_v46 = vld [vmem:[%s464_s20 + $0xf8] sm:$0xff] }
  0x19   : > { %315 = vst.msk [vmem:[%s492_s25 + $0x20] sm:$0xff] %vm310_vm0, %v282_v35  ;;  %v286_v57 = vmax.f32 %v254_v47, 0.0  ;;  %v287_v60 = vmax.f32 %v255_v48, 0.0  ;;  %v288_v61 = vmax.f32 %v256_v49, 0.0  ;;  %v260_v2 = vadd.f32 %v469_v1, %v224_v50 }
  0x1a   : > { %316 = vst.msk [vmem:[%s492_s25 + $0x28] sm:$0xff] %vm310_vm0, %v283_v38  ;;  %v226_v3 = vmul.f32 %v459_v0, %v190_v54  ;;  %v227_v4 = vmul.f32 %v459_v0, %v191_v55  ;;  %v228_v5 = vmul.f32 %v459_v0, %v192_v56  ;;  %v289_v7 = vmax.f32 %v257_v52, 0.0  ;;  %v203_v38 = vld [vmem:[%s464_s20 + $0xe8] sm:$0xff] }
  0x1b   : > { %317 = vst.msk [vmem:[%s492_s25 + $0x30] sm:$0xff] %vm310_vm0, %v284_v43  ;;  %v261_v8 = vadd.f32 %v469_v1, %v225_v53  ;;  %v229_v9 = vmul.f32 %v459_v0, %v193_v59  ;;  %v290_v11 = vmax.f32 %v258_v58, 0.0  ;;  %v230_v13 = vmul.f32 %v459_v0, %v194_v63 }
  0x1c   : > { %318 = vst.msk [vmem:[%s492_s25 + $0x38] sm:$0xff] %vm310_vm0, %v285_v51  ;;  %v262_v12 = vadd.f32 %v469_v1, %v226_v3  ;;  %v291_v15 = vmax.f32 %v259_v62, 0.0  ;;  %v263_v16 = vadd.f32 %v469_v1, %v227_v4  ;;  %v231_v17 = vmul.f32 %v459_v0, %v195_v6 }
  0x1d   : > { %319 = vst.msk [vmem:[%s492_s25 + $0x40] sm:$0xff] %vm310_vm0, %v286_v57  ;;  %v292_v19 = vmax.f32 %v260_v2, 0.0  ;;  %v264_v20 = vadd.f32 %v469_v1, %v228_v5  ;;  %v232_v21 = vmul.f32 %v459_v0, %v196_v10  ;;  %v293_v23 = vmax.f32 %v261_v8, 0.0 }
  0x1e   : > { %320 = vst.msk [vmem:[%s492_s25 + $0x48] sm:$0xff] %vm310_vm0, %v287_v60  ;;  %v265_v24 = vadd.f32 %v469_v1, %v229_v9  ;;  %v233_v25 = vmul.f32 %v459_v0, %v197_v14  ;;  %v294_v27 = vmax.f32 %v262_v12, 0.0  ;;  %v266_v28 = vadd.f32 %v469_v1, %v230_v13 }
  0x1f   : > { %321 = vst.msk [vmem:[%s492_s25 + $0x50] sm:$0xff] %vm310_vm0, %v288_v61  ;;  %v234_v29 = vmul.f32 %v459_v0, %v198_v18  ;;  %v295_v31 = vmax.f32 %v263_v16, 0.0  ;;  %v267_v32 = vadd.f32 %v469_v1, %v231_v17  ;;  %v235_v33 = vmul.f32 %v459_v0, %v199_v22 }
  0x20   : > { %322 = vst.msk [vmem:[%s492_s25 + $0x58] sm:$0xff] %vm310_vm0, %v289_v7  ;;  %v296_v35 = vmax.f32 %v264_v20, 0.0  ;;  %v268_v36 = vadd.f32 %v469_v1, %v232_v21  ;;  %v236_v37 = vmul.f32 %v459_v0, %v200_v26  ;;  %v297_v39 = vmax.f32 %v265_v24, 0.0 }
  0x21   : > { %323 = vst.msk [vmem:[%s492_s25 + $0x60] sm:$0xff] %vm310_vm0, %v290_v11  ;;  %v269_v40 = vadd.f32 %v469_v1, %v233_v25  ;;  %v237_v41 = vmul.f32 %v459_v0, %v201_v30  ;;  %v298_v43 = vmax.f32 %v266_v28, 0.0  ;;  %v270_v44 = vadd.f32 %v469_v1, %v234_v29 }
  0x22   : > { %324 = vst.msk [vmem:[%s492_s25 + $0x68] sm:$0xff] %vm310_vm0, %v291_v15  ;;  %v238_v45 = vmul.f32 %v459_v0, %v202_v34  ;;  %v299_v47 = vmax.f32 %v267_v32, 0.0  ;;  %v271_v48 = vadd.f32 %v469_v1, %v235_v33  ;;  %v239_v49 = vmul.f32 %v459_v0, %v203_v38 }
  0x23   : > { %325 = vst.msk [vmem:[%s492_s25 + $0x70] sm:$0xff] %vm310_vm0, %v292_v19  ;;  %v300_v50 = vmax.f32 %v268_v36, 0.0  ;;  %v272_v51 = vadd.f32 %v469_v1, %v236_v37  ;;  %v240_v52 = vmul.f32 %v459_v0, %v204_v42  ;;  %v301_v53 = vmax.f32 %v269_v40, 0.0 }
  0x24   : > { %326 = vst.msk [vmem:[%s492_s25 + $0x78] sm:$0xff] %vm310_vm0, %v293_v23  ;;  %v273_v54 = vadd.f32 %v469_v1, %v237_v41  ;;  %v241_v55 = vmul.f32 %v459_v0, %v205_v46  ;;  %v302_v56 = vmax.f32 %v270_v44, 0.0  ;;  %v274_v57 = vadd.f32 %v469_v1, %v238_v45 }
  0x25   : > { %327 = vst.msk [vmem:[%s492_s25 + $0x80] sm:$0xff] %vm310_vm0, %v294_v27  ;;  %v303_v58 = vmax.f32 %v271_v48, 0.0  ;;  %v275_v59 = vadd.f32 %v469_v1, %v239_v49  ;;  %v304_v60 = vmax.f32 %v272_v51, 0.0  ;;  %v276_v0 = vadd.f32 %v469_v1, %v240_v52 }
  0x26   : > { %328 = vst.msk [vmem:[%s492_s25 + $0x88] sm:$0xff] %vm310_vm0, %v295_v31  ;;  %v305_v61 = vmax.f32 %v273_v54, 0.0  ;;  %v277_v62 = vadd.f32 %v469_v1, %v241_v55  ;;  %v306_v63 = vmax.f32 %v274_v57, 0.0 }
  0x27   : > { %329 = vst.msk [vmem:[%s492_s25 + $0x90] sm:$0xff] %vm310_vm0, %v296_v35  ;;  %v307_v2 = vmax.f32 %v275_v59, 0.0  ;;  %v308_v3 = vmax.f32 %v276_v0, 0.0 }
  0x28   : > { %330 = vst.msk [vmem:[%s492_s25 + $0x98] sm:$0xff] %vm310_vm0, %v297_v39  ;;  %v309_v4 = vmax.f32 %v277_v62, 0.0 }
  0x29   : > { %331 = vst.msk [vmem:[%s492_s25 + $0xa0] sm:$0xff] %vm310_vm0, %v298_v43 }
  0x2a   : > { %332 = vst.msk [vmem:[%s492_s25 + $0xa8] sm:$0xff] %vm310_vm0, %v299_v47 }
  0x2b   : > { %333 = vst.msk [vmem:[%s492_s25 + $0xb0] sm:$0xff] %vm310_vm0, %v300_v50 }
  0x2c   : > { %334 = vst.msk [vmem:[%s492_s25 + $0xb8] sm:$0xff] %vm310_vm0, %v301_v53 }
  0x2d   : > { %335 = vst.msk [vmem:[%s492_s25 + $0xc0] sm:$0xff] %vm310_vm0, %v302_v56 }
  0x2e   : > { %336 = vst.msk [vmem:[%s492_s25 + $0xc8] sm:$0xff] %vm310_vm0, %v303_v58 }
  0x2f   : > { %337 = vst.msk [vmem:[%s492_s25 + $0xd0] sm:$0xff] %vm310_vm0, %v304_v60 }
  0x30   : > { %338 = vst.msk [vmem:[%s492_s25 + $0xd8] sm:$0xff] %vm310_vm0, %v305_v61 }
  0x31   : > { %339 = vst.msk [vmem:[%s492_s25 + $0xe0] sm:$0xff] %vm310_vm0, %v306_v63 }
  0x32   : > { %340 = vst.msk [vmem:[%s492_s25 + $0xe8] sm:$0xff] %vm310_vm0, %v307_v2 }
  0x33   : > { %341 = vst.msk [vmem:[%s492_s25 + $0xf0] sm:$0xff] %vm310_vm0, %v308_v3 }
  0x34   : > { %342 = vst.msk [vmem:[%s492_s25 + $0xf8] sm:$0xff] %vm310_vm0, %v309_v4 }
  0x35 PF: > { %s13_s12 = sadd.s32 1, %s426_s12  }
  0x36   : > { %p10_p4 = scmp.ge.s32.totalorder %s13_s12, 4  }
  0x38   :  { %12 = sbr.rel (!%p10_p4) target bundleno = 1 (0x1), region = 62 }

// kernel: basic_block_forward.4
= control target key start
LH: loop header
LB: loop body
LE: loop exit
PB: predicated region body
PF: predicated region fallthrough
CT: control target
= control target key end

     0   :  { %s1044_s15 = smov 0   ;;  %s1402_s0 = inlined_call_operand.vmem [shape: bf16[512,108], index: 0, kind: input, shape index: {}]   ;;  %s1403_s1 = inlined_call_operand.vmem [shape: bf16[108,4], index: 1, kind: input, shape index: {}]   ;;  %s1404_s2 = inlined_call_operand.vmem [shape: f32[512,4], index: 2, kind: output, shape index: {0}]   ;;  %s1405_s3 = inlined_call_operand.vmem [shape: f32[2,1,4], index: 3, kind: output, shape index: {1}]   ;;  %s1406_s4 = inlined_call_operand.vmem [shape: f32[2,1,4], index: 4, kind: output, shape index: {2}]  }
   0x1 LB: > { %s1050_s16 = sadd.s32 4294967295, %s1017_s15   ;;  %p844_p0 = scmp.ge.s32.totalorder %s1017_s15, 1  ;;  %s1017_s15 = sphi %s1044_s15, %s15_s15  }
   0x2   : > { %p168_p1 = scmp.lt.s32.totalorder %s1017_s15, 3 }
   0x4   : > { %p169_p2 = pnand %p844_p0, %p168_p1 }
   0x5   : > { %s845_s25 = sshll.u32 (!%p169_p2), %s1050_s16, 5  ;;  %p212_p4 = scmp.lt.s32.totalorder (!%p169_p2), %s1050_s16, 1 }
   0x6   : > { %172 = sbr.rel (%p169_p2) target bundleno = 290 (0x122), region = 28  ;;  %p201_p3 = scmp.lt.s32.totalorder (!%p169_p2), %s845_s25, 63 }
   0xb   : > { %v939_v0 = vld [vmem:[%s1403_s1 + $0x30] sm:$0xf]  ;;  %v981_v1 = vld [vmem:[%s1403_s1 + $0x30] sm:$0x30]  ;;  %vm435_vm0 = vcmask 1045504   ;;  %v980_v4 = vld [vmem:[%s1403_s1 + $0x28] sm:$0xff] }
   0xc   : > { %v940_v2 = vor.u32 %v981_v1, %v939_v0  ;;  %v979_v5 = vld [vmem:[%s1403_s1 + $0x20] sm:$0xff]  ;;  %v978_v6 = vld [vmem:[%s1403_s1 + $0x18] sm:$0xff]  ;;  %v977_v7 = vld [vmem:[%s1403_s1 + $0x10] sm:$0xff]  ;;  %s1408_s25 = smov (!%p201_p3, %s845_s25), 63  ;;  %vm386_vm1 = vcmask 883712   ;;  %vm528_vm2 = vcmask 31744  }
   0xd   : > { %v976_v8 = vld [vmem:[%s1403_s1 + $0x8] sm:$0xff]  ;;  %s846_s6 = sshll.u32 %s1408_s25, 2  ;;  %v975_v9 = vld [vmem:[%s1403_s1] sm:$0xff]  ;;  %s848_s12 = sshll.u32 %s1408_s25, 3  ;;  %vm630_vm3 = vcmask 24576  }
   0xe   : > { %v437_v3 = vsel %vm435_vm0, %v940_v2, 0  ;;  %s1085_s11 = scalar_lea.vmem %s1402_s0, %s846_s6  ;;  %s1123_s17 = scalar_lea.vmem %s1404_s2, %s848_s12 }
   0xf   : > { %440 = vmatpush.bf16.msra.mxu0 %v437_v3  ;;  %982 = vmatpush.bf16.msra.mxu1 %v437_v3  ;;  %v959_v10 = vld [vmem:[%s1085_s11] sm:$0xff]  ;;  %v960_v14 = vld [vmem:[%s1085_s11 + $0x8] sm:$0xff]  ;;  %v961_v18 = vld [vmem:[%s1085_s11 + $0x10] sm:$0xff]  ;;  %s1410_s16 = smov (!%p212_p4, %s1050_s16), 1 }
  0x10   : > { %983 = vmatpush.bf16.msra.mxu2 %v437_v3  ;;  %984 = vmatpush.bf16.msra.mxu3 %v437_v3  ;;  %v963_v11 = vld [vmem:[%s1085_s11 + $0x20] sm:$0xff]  ;;  %v964_v15 = vld [vmem:[%s1085_s11 + $0x28] sm:$0xff]  ;;  %v965_v19 = vld [vmem:[%s1085_s11 + $0x30] sm:$0xff]  ;;  %s214_s20 = scalar_lea.vmem %s1405_s3, %s1410_s16  ;;  %s217_s23 = scalar_lea.vmem %s1406_s4, %s1410_s16 }
  0x11   : > { %v967_v12 = vld [vmem:[%s1085_s11 + $0x40] sm:$0xff]  ;;  %v968_v16 = vld [vmem:[%s1085_s11 + $0x48] sm:$0xff]  ;;  %v969_v20 = vld [vmem:[%s1085_s11 + $0x50] sm:$0xff] }
  0x12   : > { %v971_v13 = vld [vmem:[%s1085_s11 + $0x60] sm:$0xff]  ;;  %v972_v17 = vld [vmem:[%s1085_s11 + $0x68] sm:$0xff]  ;;  %v973_v21 = vld [vmem:[%s1085_s11 + $0x70] sm:$0xff] }
  0x13   : > { %441 = vmatpush.bf16.msra.mxu0 %v980_v4  ;;  %985 = vmatpush.bf16.msra.mxu1 %v980_v4  ;;  %v962_v22 = vld [vmem:[%s1085_s11 + $0x18] sm:$0xff] }
  0x14   : > { %986 = vmatpush.bf16.msra.mxu2 %v980_v4  ;;  %987 = vmatpush.bf16.msra.mxu3 %v980_v4  ;;  %v966_v23 = vld [vmem:[%s1085_s11 + $0x38] sm:$0xff] }
  0x15   : > { %v970_v24 = vld [vmem:[%s1085_s11 + $0x58] sm:$0xff] }
  0x16   : > { %v974_v25 = vld [vmem:[%s1085_s11 + $0x78] sm:$0xff] }
  0x17   : > { %442 = vmatpush.bf16.msra.mxu0 %v979_v5  ;;  %988 = vmatpush.bf16.msra.mxu1 %v979_v5 }
  0x18   : > { %989 = vmatpush.bf16.msra.mxu2 %v979_v5  ;;  %990 = vmatpush.bf16.msra.mxu3 %v979_v5 }
  0x1b   : > { %443 = vmatpush.bf16.msra.mxu0 %v978_v6  ;;  %991 = vmatpush.bf16.msra.mxu1 %v978_v6 }
  0x1c   : > { %992 = vmatpush.bf16.msra.mxu2 %v978_v6  ;;  %993 = vmatpush.bf16.msra.mxu3 %v978_v6 }
  0x1f   : > { %444 = vmatpush.bf16.msra.mxu0 %v977_v7  ;;  %994 = vmatpush.bf16.msra.mxu1 %v977_v7 }
  0x20   : > { %995 = vmatpush.bf16.msra.mxu2 %v977_v7  ;;  %996 = vmatpush.bf16.msra.mxu3 %v977_v7 }
  0x23   : > { %445 = vmatpush.bf16.msra.mxu0 %v976_v8  ;;  %997 = vmatpush.bf16.msra.mxu1 %v976_v8 }
  0x24   : > { %998 = vmatpush.bf16.msra.mxu2 %v976_v8  ;;  %999 = vmatpush.bf16.msra.mxu3 %v976_v8 }
  0x27   : > { %446 = vmatpush.bf16.msra.mxu0 %v975_v9  ;;  %1000 = vmatpush.bf16.msra.mxu1 %v975_v9 }
  0x28   : > { %1001 = vmatpush.bf16.msra.mxu2 %v975_v9  ;;  %1002 = vmatpush.bf16.msra.mxu3 %v975_v9 }
  0x2a   : > { %941 = vmatmul.msk.bf16.vlgmr.msra.gmra.mxu0 %vm386_vm1, %v959_v10  ;;  %945 = vmatmul.msk.bf16.vlgmr.msra.gmra.mxu1 %vm386_vm1, %v963_v11 }
  0x2b   : > { %949 = vmatmul.msk.bf16.vlgmr.msra.gmra.mxu2 %vm386_vm1, %v967_v12  ;;  %953 = vmatmul.msk.bf16.vlgmr.msra.gmra.mxu3 %vm386_vm1, %v971_v13 }
  0x3a   : > { %942 = vmatmul.msk.bf16.gmra.mxu0 %vm386_vm1, %v960_v14  ;;  %946 = vmatmul.msk.bf16.gmra.mxu1 %vm386_vm1, %v964_v15 }
  0x3b   : > { %950 = vmatmul.msk.bf16.gmra.mxu2 %vm386_vm1, %v968_v16  ;;  %954 = vmatmul.msk.bf16.gmra.mxu3 %vm386_vm1, %v972_v17 }
  0x4a   : > { %943 = vmatmul.msk.bf16.gmra.mxu0 %vm386_vm1, %v961_v18  ;;  %947 = vmatmul.msk.bf16.gmra.mxu1 %vm386_vm1, %v965_v19 }
  0x4b   : > { %951 = vmatmul.msk.bf16.gmra.mxu2 %vm386_vm1, %v969_v20  ;;  %955 = vmatmul.msk.bf16.gmra.mxu3 %vm386_vm1, %v973_v21 }
  0x5a   : > { %944 = vmatmul.msk.bf16.gmra.mxu0 %vm386_vm1, %v962_v22  ;;  %948 = vmatmul.msk.bf16.gmra.mxu1 %vm386_vm1, %v966_v23 }
  0x5b   : > { %952 = vmatmul.msk.bf16.gmra.mxu2 %vm386_vm1, %v970_v24  ;;  %956 = vmatmul.msk.bf16.gmra.mxu3 %vm386_vm1, %v974_v25 }
  0xa7   : > { %v448_v26 = vpop.f32.mrf.mxu0  ;;  %v1125_v27 = vpop.f32.mrf.mxu1 }
  0xa8   : > { %529 = vst.msk [vmem:[%s1123_s17] sm:$0xff] %vm528_vm2, %v448_v26  ;;  %v632_v49 = vmul.f32 %v448_v26, %v448_v26  ;;  %v561_v52 = vsel %vm528_vm2, %v448_v26, 0.0  ;;  %v640_v23 = vmul.f32 %v1125_v27, %v1125_v27 }
  0xa9   : > { %537 = vst.msk [vmem:[%s1123_s17 + $0x40] sm:$0xff] %vm528_vm2, %v1125_v27 }
  0xaa   : > { %v664_v57 = vsel %vm528_vm2, %v632_v49, 0.0 }
  0xae   : > { %v1132_v28 = vpop.f32.mrf.mxu2  ;;  %v1141_v31 = vpop.f32.mrf.mxu3 }
  0xaf   : > { %v450_v29 = vpop.f32.mrf.mxu0  ;;  %v1134_v30 = vpop.f32.mrf.mxu1  ;;  %545 = vst.msk [vmem:[%s1123_s17 + $0x80] sm:$0xff] %vm528_vm2, %v1132_v28 }
  0xb0   : > { %530 = vst.msk [vmem:[%s1123_s17 + $0x8] sm:$0xff] %vm528_vm2, %v450_v29  ;;  %v633_v47 = vmul.f32 %v450_v29, %v450_v29  ;;  %v562_v50 = vsel %vm528_vm2, %v450_v29, 0.0 }
  0xb1   : > { %538 = vst.msk [vmem:[%s1123_s17 + $0x48] sm:$0xff] %vm528_vm2, %v1134_v30  ;;  %v563_v56 = vadd.f32 %v562_v50, %v561_v52  ;;  %v679_v50 = vsel %vm528_vm2, %v640_v23, 0.0 }
  0xb2   : > { %553 = vst.msk [vmem:[%s1123_s17 + $0xc0] sm:$0xff] %vm528_vm2, %v1141_v31  ;;  %v665_v53 = vsel %vm528_vm2, %v633_v47, 0.0 }
  0xb3   : > { %v666_v62 = vadd.f32 %v665_v53, %v664_v57 }
  0xb6   : > { %v1149_v32 = vpop.f32.mrf.mxu2  ;;  %v1158_v35 = vpop.f32.mrf.mxu3 }
  0xb7   : > { %v453_v33 = vpop.f32.mrf.mxu0  ;;  %v1151_v34 = vpop.f32.mrf.mxu1  ;;  %546 = vst.msk [vmem:[%s1123_s17 + $0x88] sm:$0xff] %vm528_vm2, %v1149_v32  ;;  %v649_v23 = vmul.f32 %v1149_v32, %v1149_v32 }
  0xb8   : > { %531 = vst.msk [vmem:[%s1123_s17 + $0x10] sm:$0xff] %vm528_vm2, %v453_v33  ;;  %v634_v51 = vmul.f32 %v453_v33, %v453_v33  ;;  %v564_v54 = vsel %vm528_vm2, %v453_v33, 0.0  ;;  %v642_v52 = vmul.f32 %v1151_v34, %v1151_v34 }
  0xb9   : > { %539 = vst.msk [vmem:[%s1123_s17 + $0x50] sm:$0xff] %vm528_vm2, %v1151_v34  ;;  %v565_v63 = vadd.f32 %v564_v54, %v563_v56 }
  0xba   : > { %554 = vst.msk [vmem:[%s1123_s17 + $0xc8] sm:$0xff] %vm528_vm2, %v1158_v35  ;;  %v667_v58 = vsel %vm528_vm2, %v634_v51, 0.0  ;;  %v578_v51 = vsel %vm528_vm2, %v1134_v30, 0.0 }
  0xbb   : > { %v668_v6 = vadd.f32 %v667_v58, %v666_v62 }
  0xbe   : > { %v1166_v36 = vpop.f32.mrf.mxu2  ;;  %v1175_v39 = vpop.f32.mrf.mxu3 }
  0xbf   : > { %v455_v37 = vpop.f32.mrf.mxu0  ;;  %v1168_v38 = vpop.f32.mrf.mxu1  ;;  %547 = vst.msk [vmem:[%s1123_s17 + $0x90] sm:$0xff] %vm528_vm2, %v1166_v36 }
  0xc0   : > { %532 = vst.msk [vmem:[%s1123_s17 + $0x18] sm:$0xff] %vm528_vm2, %v455_v37  ;;  %v635_v55 = vmul.f32 %v455_v37, %v455_v37  ;;  %v566_v59 = vsel %vm528_vm2, %v455_v37, 0.0  ;;  %v576_v37 = vsel %vm528_vm2, %v1125_v27, 0.0  ;;  %v643_v56 = vmul.f32 %v1168_v38, %v1168_v38 }
  0xc1   : > { %540 = vst.msk [vmem:[%s1123_s17 + $0x58] sm:$0xff] %vm528_vm2, %v1168_v38  ;;  %v567_v7 = vadd.f32 %v566_v59, %v565_v63 }
  0xc2   : > { %555 = vst.msk [vmem:[%s1123_s17 + $0xd0] sm:$0xff] %vm528_vm2, %v1175_v39  ;;  %v669_v2 = vsel %vm528_vm2, %v635_v55, 0.0  ;;  %v580_v55 = vsel %vm528_vm2, %v1151_v34, 0.0 }
  0xc3   : > { %v670_v11 = vadd.f32 %v669_v2, %v668_v6  ;;  %v685_v2 = vsel %vm528_vm2, %v643_v56, 0.0 }
  0xc6   : > { %v1183_v40 = vpop.f32.mrf.mxu2  ;;  %v1192_v43 = vpop.f32.mrf.mxu3 }
  0xc7   : > { %v458_v41 = vpop.f32.mrf.mxu0  ;;  %v1185_v42 = vpop.f32.mrf.mxu1  ;;  %548 = vst.msk [vmem:[%s1123_s17 + $0x98] sm:$0xff] %vm528_vm2, %v1183_v40 }
  0xc8   : > { %533 = vst.msk [vmem:[%s1123_s17 + $0x20] sm:$0xff] %vm528_vm2, %v458_v41  ;;  %v636_v60 = vmul.f32 %v458_v41, %v458_v41  ;;  %v568_v3 = vsel %vm528_vm2, %v458_v41, 0.0  ;;  %v641_v41 = vmul.f32 %v1134_v30, %v1134_v30  ;;  %v683_v30 = vsel %vm528_vm2, %v642_v52, 0.0 }
  0xc9   : > { %541 = vst.msk [vmem:[%s1123_s17 + $0x60] sm:$0xff] %vm528_vm2, %v1185_v42  ;;  %v569_v12 = vadd.f32 %v568_v3, %v567_v7  ;;  %v644_v62 = vmul.f32 %v1185_v42, %v1185_v42  ;;  %v584_v3 = vsel %vm528_vm2, %v1185_v42, 0.0 }
  0xca   : > { %556 = vst.msk [vmem:[%s1123_s17 + $0xd8] sm:$0xff] %vm528_vm2, %v1192_v43  ;;  %v671_v8 = vsel %vm528_vm2, %v636_v60, 0.0  ;;  %v681_v54 = vsel %vm528_vm2, %v641_v41, 0.0  ;;  %v582_v60 = vsel %vm528_vm2, %v1168_v38, 0.0 }
  0xcb   : > { %v672_v15 = vadd.f32 %v671_v8, %v670_v11  ;;  %v687_v7 = vsel %vm528_vm2, %v644_v62, 0.0 }
  0xce   : > { %v1200_v44 = vpop.f32.mrf.mxu2  ;;  %v1209_v48 = vpop.f32.mrf.mxu3 }
  0xcf   : > { %v460_v45 = vpop.f32.mrf.mxu0  ;;  %v1202_v46 = vpop.f32.mrf.mxu1  ;;  %549 = vst.msk [vmem:[%s1123_s17 + $0xa0] sm:$0xff] %vm528_vm2, %v1200_v44  ;;  %v652_v52 = vmul.f32 %v1200_v44, %v1200_v44 }
  0xd0   : > { %534 = vst.msk [vmem:[%s1123_s17 + $0x28] sm:$0xff] %vm528_vm2, %v460_v45  ;;  %v637_v4 = vmul.f32 %v460_v45, %v460_v45  ;;  %v570_v9 = vsel %vm528_vm2, %v460_v45, 0.0  ;;  %v586_v8 = vsel %vm528_vm2, %v1202_v46, 0.0 }
  0xd1   : > { %542 = vst.msk [vmem:[%s1123_s17 + $0x68] sm:$0xff] %vm528_vm2, %v1202_v46  ;;  %v571_v16 = vadd.f32 %v570_v9, %v569_v12 }
  0xd2   : > { %557 = vst.msk [vmem:[%s1123_s17 + $0xe0] sm:$0xff] %vm528_vm2, %v1209_v48  ;;  %v673_v13 = vsel %vm528_vm2, %v637_v4, 0.0  ;;  %v645_v4 = vmul.f32 %v1202_v46, %v1202_v46 }
  0xd3   : > { %v674_v19 = vadd.f32 %v673_v13, %v672_v15 }
  0xd4   : > { %v689_v12 = vsel %vm528_vm2, %v645_v4, 0.0  ;;  %v656_v4 = vmul.f32 %v1141_v31, %v1141_v31 }
  0xd6   : > { %v1224_v61 = vpop.f32.mrf.mxu2  ;;  %v1235_v5 = vpop.f32.mrf.mxu3 }
  0xd7   : > { %v463_v0 = vpop.f32.mrf.mxu0  ;;  %v1226_v1 = vpop.f32.mrf.mxu1  ;;  %550 = vst.msk [vmem:[%s1123_s17 + $0xa8] sm:$0xff] %vm528_vm2, %v1224_v61 }
  0xd8   : > { %535 = vst.msk [vmem:[%s1123_s17 + $0x30] sm:$0xff] %vm528_vm2, %v463_v0  ;;  %v638_v10 = vmul.f32 %v463_v0, %v463_v0  ;;  %v572_v14 = vsel %vm528_vm2, %v463_v0, 0.0  ;;  %v646_v9 = vmul.f32 %v1226_v1, %v1226_v1  ;;  %v588_v42 = vsel %vm528_vm2, %v1226_v1, 0.0 }
  0xd9   : > { %543 = vst.msk [vmem:[%s1123_s17 + $0x70] sm:$0xff] %vm528_vm2, %v1226_v1  ;;  %v573_v20 = vadd.f32 %v572_v14, %v571_v16  ;;  %v648_v16 = vmul.f32 %v1132_v28, %v1132_v28 }
  0xda   : > { %558 = vst.msk [vmem:[%s1123_s17 + $0xe8] sm:$0xff] %vm528_vm2, %v1235_v5  ;;  %v675_v17 = vsel %vm528_vm2, %v638_v10, 0.0 }
  0xdb   : > { %v676_v29 = vadd.f32 %v675_v17, %v674_v19  ;;  %v691_v17 = vsel %vm528_vm2, %v646_v9, 0.0 }
  0xde   : > { %v1248_v18 = vpop.f32.mrf.mxu2  ;;  %v1258_v26 = vpop.f32.mrf.mxu3 }
  0xdf   : > { %v465_v21 = vpop.f32.mrf.mxu0  ;;  %v485_v22 = vpop.f32.mrf.mxu1  ;;  %551 = vst.msk [vmem:[%s1123_s17 + $0xb0] sm:$0xff] %vm528_vm2, %v1248_v18 }
  0xe0   : > { %536 = vst.msk [vmem:[%s1123_s17 + $0x38] sm:$0xff] %vm528_vm2, %v465_v21  ;;  %v574_v24 = vsel %vm528_vm2, %v465_v21, 0.0  ;;  %v639_v25 = vmul.f32 %v465_v21, %v465_v21  ;;  %v647_v13 = vmul.f32 %v485_v22, %v485_v22  ;;  %v590_v46 = vsel %vm528_vm2, %v485_v22, 0.0 }
  0xe1   : > { %v575_v33 = vadd.f32 %v574_v24, %v573_v20  ;;  %544 = vst.msk [vmem:[%s1123_s17 + $0x78] sm:$0xff] %vm528_vm2, %v485_v22  ;;  %v592_v21 = vsel %vm528_vm2, %v1132_v28, 0.0  ;;  %v650_v22 = vmul.f32 %v1166_v36, %v1166_v36  ;;  %v596_v28 = vsel %vm528_vm2, %v1166_v36, 0.0 }
  0xe2   : > { %v677_v45 = vsel %vm528_vm2, %v639_v25, 0.0  ;;  %559 = vst.msk [vmem:[%s1123_s17 + $0xf0] sm:$0xff] %vm528_vm2, %v1258_v26  ;;  %v693_v1 = vsel %vm528_vm2, %v647_v13, 0.0  ;;  %v600_v36 = vsel %vm528_vm2, %v1200_v44, 0.0  ;;  %v604_v44 = vsel %vm528_vm2, %v1248_v18, 0.0 }
  0xe3   : > { %v577_v47 = vadd.f32 %v576_v37, %v575_v33  ;;  %v678_v49 = vadd.f32 %v677_v45, %v676_v29  ;;  %v695_v29 = vsel %vm528_vm2, %v648_v16, 0.0  ;;  %v594_v33 = vsel %vm528_vm2, %v1149_v32, 0.0 }
  0xe4   : > { %v697_v45 = vsel %vm528_vm2, %v649_v23, 0.0  ;;  %v598_v32 = vsel %vm528_vm2, %v1183_v40, 0.0  ;;  %v659_v16 = vmul.f32 %v1192_v43, %v1192_v43 }
  0xe5   : > { %v579_v27 = vadd.f32 %v578_v51, %v577_v47  ;;  %v680_v53 = vadd.f32 %v679_v50, %v678_v49  ;;  %v651_v47 = vmul.f32 %v1183_v40, %v1183_v40  ;;  %v699_v51 = vsel %vm528_vm2, %v650_v22, 0.0 }
  0xe6   : > { %v1280_v57 = vpop.f32.mrf.mxu2  ;;  %v1290_v63 = vpop.f32.mrf.mxu3  ;;  %v602_v40 = vsel %vm528_vm2, %v1224_v61, 0.0  ;;  %v662_v22 = vmul.f32 %v1258_v26, %v1258_v26 }
  0xe7   : > { %v581_v58 = vadd.f32 %v580_v55, %v579_v27  ;;  %v682_v59 = vadd.f32 %v681_v54, %v680_v53  ;;  %552 = vst.msk [vmem:[%s1123_s17 + $0xb8] sm:$0xff] %vm528_vm2, %v1280_v57  ;;  %v701_v54 = vsel %vm528_vm2, %v651_v47, 0.0  ;;  %v653_v55 = vmul.f32 %v1224_v61, %v1224_v61 }
  0xe8   : > { %560 = vst.msk [vmem:[%s1123_s17 + $0xf8] sm:$0xff] %vm528_vm2, %v1290_v63 }
  0xe9   : > { %v684_v34 = vadd.f32 %v683_v30, %v682_v59  ;;  %v583_v0 = vadd.f32 %v582_v60, %v581_v58  ;;  %v703_v59 = vsel %vm528_vm2, %v652_v52, 0.0  ;;  %v654_v30 = vmul.f32 %v1248_v18, %v1248_v18 }
  0xea   : > { %v657_v18 = vmul.f32 %v1158_v35, %v1158_v35 }
  0xeb   : > { %v585_v6 = vadd.f32 %v584_v3, %v583_v0  ;;  %v686_v38 = vadd.f32 %v685_v2, %v684_v34  ;;  %v705_v34 = vsel %vm528_vm2, %v653_v55, 0.0  ;;  %v655_v0 = vmul.f32 %v1280_v57, %v1280_v57 }
  0xec   : > { %v707_v61 = vsel %vm528_vm2, %v654_v30, 0.0 }
  0xed   : > { %v587_v10 = vadd.f32 %v586_v8, %v585_v6  ;;  %v688_v11 = vadd.f32 %v687_v7, %v686_v38  ;;  %v606_v6 = vsel %vm528_vm2, %v1280_v57, 0.0  ;;  %v608_v8 = vsel %vm528_vm2, %v1141_v31, 0.0 }
  0xee   : > { %v709_v9 = vsel %vm528_vm2, %v655_v0, 0.0  ;;  %v658_v57 = vmul.f32 %v1175_v39, %v1175_v39  ;;  %v612_v31 = vsel %vm528_vm2, %v1175_v39, 0.0  ;;  %v616_v39 = vsel %vm528_vm2, %v1209_v48, 0.0 }
  0xef   : > { %v589_v14 = vadd.f32 %v588_v42, %v587_v10  ;;  %v690_v15 = vadd.f32 %v689_v12, %v688_v11  ;;  %v711_v12 = vsel %vm528_vm2, %v656_v4, 0.0  ;;  %v610_v42 = vsel %vm528_vm2, %v1158_v35, 0.0 }
  0xf0   : > { %v614_v35 = vsel %vm528_vm2, %v1192_v43, 0.0  ;;  %v618_v43 = vsel %vm528_vm2, %v1235_v5, 0.0 }
  0xf1   : > { %v692_v19 = vadd.f32 %v691_v17, %v690_v15  ;;  %v591_v20 = vadd.f32 %v590_v46, %v589_v14  ;;  %v713_v15 = vsel %vm528_vm2, %v657_v18, 0.0 }
  0xf3   : > { %v593_v24 = vadd.f32 %v592_v21, %v591_v20  ;;  %v694_v25 = vadd.f32 %v693_v1, %v692_v19  ;;  %v715_v19 = vsel %vm528_vm2, %v658_v57, 0.0  ;;  %v660_v20 = vmul.f32 %v1209_v48, %v1209_v48 }
  0xf4   : > { %v717_v1 = vsel %vm528_vm2, %v659_v16, 0.0  ;;  %v620_v48 = vsel %vm528_vm2, %v1258_v26, 0.0 }
  0xf5   : > { %v595_v37 = vadd.f32 %v594_v33, %v593_v24  ;;  %v696_v41 = vadd.f32 %v695_v29, %v694_v25  ;;  %v661_v24 = vmul.f32 %v1235_v5, %v1235_v5  ;;  %v719_v33 = vsel %vm528_vm2, %v660_v20, 0.0 }
  0xf6   : > { %v622_v5 = vsel %vm528_vm2, %v1290_v63, 0.0 }
  0xf7   : > { %v597_v49 = vadd.f32 %v596_v28, %v595_v37  ;;  %v698_v50 = vadd.f32 %v697_v45, %v696_v41  ;;  %v721_v45 = vsel %vm528_vm2, %v661_v24, 0.0  ;;  %v663_v28 = vmul.f32 %v1290_v63, %v1290_v63 }
  0xf9   : > { %v700_v27 = vadd.f32 %v699_v51, %v698_v50  ;;  %v599_v53 = vadd.f32 %v598_v32, %v597_v49  ;;  %v723_v50 = vsel %vm528_vm2, %v662_v22, 0.0  ;;  %v725_v52 = vsel %vm528_vm2, %v663_v28, 0.0 }
  0xfb   : > { %v601_v56 = vadd.f32 %v600_v36, %v599_v53  ;;  %v702_v58 = vadd.f32 %v701_v54, %v700_v27 }
  0xfd   : > { %v603_v60 = vadd.f32 %v602_v40, %v601_v56  ;;  %v704_v62 = vadd.f32 %v703_v59, %v702_v58 }
  0xff   : > { %v706_v2 = vadd.f32 %v705_v34, %v704_v62  ;;  %v605_v3 = vadd.f32 %v604_v44, %v603_v60 }
 0x101   : > { %v708_v38 = vadd.f32 %v707_v61, %v706_v2  ;;  %v607_v7 = vadd.f32 %v606_v6, %v605_v3 }
 0x103   : > { %v609_v10 = vadd.f32 %v608_v8, %v607_v7  ;;  %v710_v11 = vadd.f32 %v709_v9, %v708_v38 }
 0x105   : > { %v611_v13 = vadd.f32 %v610_v42, %v609_v10  ;;  %v712_v14 = vadd.f32 %v711_v12, %v710_v11 }
 0x107   : > { %v613_v17 = vadd.f32 %v612_v31, %v611_v13  ;;  %v714_v46 = vadd.f32 %v713_v15, %v712_v14 }
 0x109   : > { %v716_v21 = vadd.f32 %v715_v19, %v714_v46  ;;  %v615_v23 = vadd.f32 %v614_v35, %v613_v17 }
 0x10b   : > { %v617_v25 = vadd.f32 %v616_v39, %v615_v23  ;;  %v718_v29 = vadd.f32 %v717_v1, %v716_v21 }
 0x10d   : > { %v619_v37 = vadd.f32 %v618_v43, %v617_v25  ;;  %v720_v41 = vadd.f32 %v719_v33, %v718_v29 }
 0x10f   : > { %v722_v47 = vadd.f32 %v721_v45, %v720_v41  ;;  %v621_v49 = vadd.f32 %v620_v48, %v619_v37 }
 0x111   : > { %v724_v51 = vadd.f32 %v723_v50, %v722_v47  ;;  %v623_v32 = vadd.f32 %v622_v5, %v621_v49 }
 0x113   : > { %v624_v27 = vrot.slane %v623_v32, 4  ;;  %v726_v53 = vadd.f32 %v725_v52, %v724_v51 }
 0x115   : > { %v625_v54 = vadd.f32 %v624_v27, %v623_v32  ;;  %v727_v26 = vrot.slane %v726_v53, 4 }
 0x117   : > { %v626_v36 = vrot.slane %v625_v54, 2  ;;  %v728_v55 = vadd.f32 %v727_v26, %v726_v53 }
 0x119   : > { %v627_v56 = vadd.f32 %v626_v36, %v625_v54  ;;  %v729_v58 = vrot.slane %v728_v55, 2 }
 0x11b   : > { %v628_v59 = vrot.slane %v627_v56, 1  ;;  %v730_v40 = vadd.f32 %v729_v58, %v728_v55 }
 0x11d   : > { %v629_v63 = vadd.f32 %v628_v59, %v627_v56  ;;  %v731_v30 = vrot.slane %v730_v40, 1 }
 0x11f   : > { %631 = vst.msk [vmem:[%s214_s20] sm:$0x1] %vm630_vm3, %v629_v63  ;;  %v732_v60 = vadd.f32 %v731_v30, %v730_v40 }
 0x121   : > { %733 = vst.msk [vmem:[%s217_s23] sm:$0x1] %vm630_vm3, %v732_v60 }
 0x122 PF: > { %s15_s15 = sadd.s32 1, %s1017_s15  }
 0x123   : > { %p12_p5 = scmp.ge.s32.totalorder %s15_s15, 4  }
 0x125   :  { %14 = sbr.rel (!%p12_p5) target bundleno = 1 (0x1), region = 82 }

// kernel: basic_block_forward.7
= control target key start
LH: loop header
LB: loop body
LE: loop exit
PB: predicated region body
PF: predicated region fallthrough
CT: control target
= control target key end

     0   :  { %s580_s15 = smov 0   ;;  %s813_s0 = inlined_call_operand.vmem [shape: f32[512,4], index: 0, kind: input, shape index: {}]   ;;  %s814_s1 = inlined_call_operand.vmem [shape: f32[1,4], index: 1, kind: input, shape index: {}]   ;;  %s815_s2 = inlined_call_operand.vmem [shape: f32[1,4], index: 2, kind: input, shape index: {}]   ;;  %s816_s3 = inlined_call_operand.vmem [shape: f32[512,4], index: 3, kind: input, shape index: {}]   ;;  %s817_s4 = inlined_call_operand.vmem [shape: f32[512,4], index: 4, kind: output, shape index: {}]  }
   0x1 LB: > { %s524_s16 = sadd.s32 4294967295, %s553_s15   ;;  %p528_p0 = scmp.ge.s32.totalorder %s553_s15, 1  ;;  %s553_s15 = sphi %s580_s15, %s14_s15  }
   0x2   : > { %p174_p1 = scmp.lt.s32.totalorder %s553_s15, 3 }
   0x4   : > { %p175_p2 = pnand %p528_p0, %p174_p1 }
   0x5   : > { %s529_s17 = sshll.u32 (!%p175_p2), %s524_s16, 5 }
   0x6   : > { %178 = sbr.rel (%p175_p2) target bundleno = 55 (0x37), region = 36  ;;  %p206_p3 = scmp.lt.s32.totalorder (!%p175_p2), %s529_s17, 63 }
   0xb   : > { %s819_s17 = smov (!%p206_p3, %s529_s17), 63  ;;  %v591_v0 = vld [vmem:[%s814_s1] ss:$0 sm:$0xff]  ;;  %vm423_vm0 = vcmask 31744  }
   0xc   : > { %s593_s20 = sshll.u32 %s819_s17, 3  ;;  %v610_v1 = vld [vmem:[%s815_s2] ss:$0 sm:$0xff] }
   0xd   : > { %s599_s23 = scalar_lea.vmem %s813_s0, %s593_s20  ;;  %s605_s26 = scalar_lea.vmem %s816_s3, %s593_s20 }
   0xe   : > { %v223_v2 = vld [vmem:[%s599_s23] sm:$0xff]  ;;  %v224_v3 = vld [vmem:[%s599_s23 + $0x8] sm:$0xff]  ;;  %v225_v7 = vld [vmem:[%s599_s23 + $0x10] sm:$0xff]  ;;  %s641_s5 = scalar_lea.vmem %s817_s4, %s593_s20 }
   0xf   : > { %v259_v4 = vmul.f32 %v591_v0, %v223_v2  ;;  %v327_v5 = vld [vmem:[%s605_s26] sm:$0xff]  ;;  %v260_v6 = vmul.f32 %v591_v0, %v224_v3  ;;  %v328_v8 = vld [vmem:[%s605_s26 + $0x8] sm:$0xff]  ;;  %v261_v9 = vmul.f32 %v591_v0, %v225_v7  ;;  %v226_v10 = vld [vmem:[%s599_s23 + $0x18] sm:$0xff] }
  0x10   : > { %v227_v11 = vld [vmem:[%s599_s23 + $0x20] sm:$0xff]  ;;  %v329_v14 = vld [vmem:[%s605_s26 + $0x10] sm:$0xff]  ;;  %v262_v15 = vmul.f32 %v591_v0, %v226_v10  ;;  %v330_v16 = vld [vmem:[%s605_s26 + $0x18] sm:$0xff] }
  0x11   : > { %v295_v12 = vadd.f32 %v610_v1, %v259_v4  ;;  %v296_v13 = vadd.f32 %v610_v1, %v260_v6  ;;  %v263_v17 = vmul.f32 %v591_v0, %v227_v11  ;;  %v228_v18 = vld [vmem:[%s599_s23 + $0x28] sm:$0xff]  ;;  %v297_v19 = vadd.f32 %v610_v1, %v261_v9  ;;  %v331_v20 = vld [vmem:[%s605_s26 + $0x20] sm:$0xff]  ;;  %v229_v22 = vld [vmem:[%s599_s23 + $0x30] sm:$0xff] }
  0x12   : > { %v264_v21 = vmul.f32 %v591_v0, %v228_v18  ;;  %v230_v23 = vld [vmem:[%s599_s23 + $0x38] sm:$0xff]  ;;  %v298_v26 = vadd.f32 %v610_v1, %v262_v15  ;;  %v332_v28 = vld [vmem:[%s605_s26 + $0x28] sm:$0xff]  ;;  %v265_v31 = vmul.f32 %v591_v0, %v229_v22  ;;  %v231_v33 = vld [vmem:[%s599_s23 + $0x40] sm:$0xff] }
  0x13   : > { %v359_v24 = vadd.f32 %v327_v5, %v295_v12  ;;  %v360_v25 = vadd.f32 %v328_v8, %v296_v13  ;;  %v299_v27 = vadd.f32 %v610_v1, %v263_v17  ;;  %v361_v29 = vadd.f32 %v329_v14, %v297_v19  ;;  %v232_v34 = vld [vmem:[%s599_s23 + $0x48] sm:$0xff]  ;;  %v333_v39 = vld [vmem:[%s605_s26 + $0x30] sm:$0xff]  ;;  %v334_v40 = vld [vmem:[%s605_s26 + $0x38] sm:$0xff] }
  0x14   : > { %v300_v30 = vadd.f32 %v610_v1, %v264_v21  ;;  %v266_v32 = vmul.f32 %v591_v0, %v230_v23  ;;  %v362_v37 = vadd.f32 %v330_v16, %v298_v26  ;;  %v233_v41 = vld [vmem:[%s599_s23 + $0x50] sm:$0xff]  ;;  %v301_v44 = vadd.f32 %v610_v1, %v265_v31  ;;  %v234_v46 = vld [vmem:[%s599_s23 + $0x58] sm:$0xff]  ;;  %v235_v47 = vld [vmem:[%s599_s23 + $0x60] sm:$0xff] }
  0x15   : > { %v391_v35 = vmax.f32 %v359_v24, 0.0  ;;  %v392_v36 = vmax.f32 %v360_v25, 0.0  ;;  %v363_v38 = vadd.f32 %v331_v20, %v299_v27  ;;  %v393_v42 = vmax.f32 %v361_v29, 0.0  ;;  %v236_v52 = vld [vmem:[%s599_s23 + $0x68] sm:$0xff]  ;;  %v335_v56 = vld [vmem:[%s605_s26 + $0x40] sm:$0xff]  ;;  %v337_v61 = vld [vmem:[%s605_s26 + $0x50] sm:$0xff] }
  0x16   : > { %v364_v43 = vadd.f32 %v332_v28, %v300_v30  ;;  %v302_v45 = vadd.f32 %v610_v1, %v266_v32  ;;  %v394_v48 = vmax.f32 %v362_v37, 0.0  ;;  %v267_v50 = vmul.f32 %v591_v0, %v231_v33  ;;  %v336_v57 = vld [vmem:[%s605_s26 + $0x48] sm:$0xff]  ;;  %v237_v2 = vld [vmem:[%s599_s23 + $0x70] sm:$0xff]  ;;  %v238_v3 = vld [vmem:[%s599_s23 + $0x78] sm:$0xff] }
  0x17   : > { %424 = vst.msk [vmem:[%s641_s5] sm:$0xff] %vm423_vm0, %v391_v35  ;;  %v395_v49 = vmax.f32 %v363_v38, 0.0  ;;  %v268_v51 = vmul.f32 %v591_v0, %v232_v34  ;;  %v365_v54 = vadd.f32 %v333_v39, %v301_v44  ;;  %v269_v58 = vmul.f32 %v591_v0, %v233_v41  ;;  %v338_v7 = vld [vmem:[%s605_s26 + $0x58] sm:$0xff]  ;;  %v339_v8 = vld [vmem:[%s605_s26 + $0x60] sm:$0xff]  ;;  %v340_v14 = vld [vmem:[%s605_s26 + $0x68] sm:$0xff] }
  0x18   : > { %425 = vst.msk [vmem:[%s641_s5 + $0x8] sm:$0xff] %vm423_vm0, %v392_v36  ;;  %v396_v53 = vmax.f32 %v364_v43, 0.0  ;;  %v366_v55 = vadd.f32 %v334_v40, %v302_v45  ;;  %v303_v59 = vadd.f32 %v610_v1, %v267_v50  ;;  %v270_v62 = vmul.f32 %v591_v0, %v234_v46  ;;  %v239_v19 = vld [vmem:[%s599_s23 + $0x80] sm:$0xff]  ;;  %v240_v20 = vld [vmem:[%s599_s23 + $0x88] sm:$0xff]  ;;  %v341_v25 = vld [vmem:[%s605_s26 + $0x70] sm:$0xff] }
  0x19   : > { %426 = vst.msk [vmem:[%s641_s5 + $0x10] sm:$0xff] %vm423_vm0, %v393_v42  ;;  %v304_v60 = vadd.f32 %v610_v1, %v268_v51  ;;  %v271_v63 = vmul.f32 %v591_v0, %v235_v47  ;;  %v397_v4 = vmax.f32 %v365_v54, 0.0  ;;  %v305_v6 = vadd.f32 %v610_v1, %v269_v58  ;;  %v342_v26 = vld [vmem:[%s605_s26 + $0x78] sm:$0xff]  ;;  %v241_v27 = vld [vmem:[%s599_s23 + $0x90] sm:$0xff]  ;;  %v243_v33 = vld [vmem:[%s599_s23 + $0xa0] sm:$0xff] }
  0x1a   : > { %427 = vst.msk [vmem:[%s641_s5 + $0x18] sm:$0xff] %vm423_vm0, %v394_v48  ;;  %v398_v5 = vmax.f32 %v366_v55, 0.0  ;;  %v272_v9 = vmul.f32 %v591_v0, %v236_v52  ;;  %v367_v10 = vadd.f32 %v335_v56, %v303_v59  ;;  %v306_v12 = vadd.f32 %v610_v1, %v270_v62  ;;  %v242_v32 = vld [vmem:[%s599_s23 + $0x98] sm:$0xff]  ;;  %v244_v38 = vld [vmem:[%s599_s23 + $0xa8] sm:$0xff]  ;;  %v343_v42 = vld [vmem:[%s605_s26 + $0x80] sm:$0xff] }
  0x1b   : > { %428 = vst.msk [vmem:[%s641_s5 + $0x20] sm:$0xff] %vm423_vm0, %v395_v49  ;;  %v368_v11 = vadd.f32 %v336_v57, %v304_v60  ;;  %v307_v13 = vadd.f32 %v610_v1, %v271_v63  ;;  %v369_v15 = vadd.f32 %v337_v61, %v305_v6  ;;  %v273_v17 = vmul.f32 %v591_v0, %v237_v2  ;;  %v344_v43 = vld [vmem:[%s605_s26 + $0x88] sm:$0xff]  ;;  %v345_v47 = vld [vmem:[%s605_s26 + $0x90] sm:$0xff]  ;;  %v246_v51 = vld [vmem:[%s599_s23 + $0xb8] sm:$0xff] }
  0x1c   : > { %429 = vst.msk [vmem:[%s641_s5 + $0x28] sm:$0xff] %vm423_vm0, %v396_v53  ;;  %v308_v16 = vadd.f32 %v610_v1, %v272_v9  ;;  %v274_v18 = vmul.f32 %v591_v0, %v238_v3  ;;  %v399_v21 = vmax.f32 %v367_v10, 0.0  ;;  %v370_v23 = vadd.f32 %v338_v7, %v306_v12  ;;  %v245_v50 = vld [vmem:[%s599_s23 + $0xb0] sm:$0xff]  ;;  %v346_v55 = vld [vmem:[%s605_s26 + $0x98] sm:$0xff]  ;;  %v347_v56 = vld [vmem:[%s605_s26 + $0xa0] sm:$0xff] }
  0x1d   : > { %430 = vst.msk [vmem:[%s641_s5 + $0x30] sm:$0xff] %vm423_vm0, %v397_v4  ;;  %v400_v22 = vmax.f32 %v368_v11, 0.0  ;;  %v371_v24 = vadd.f32 %v339_v8, %v307_v13  ;;  %v401_v28 = vmax.f32 %v369_v15, 0.0  ;;  %v309_v30 = vadd.f32 %v610_v1, %v273_v17  ;;  %v348_v62 = vld [vmem:[%s605_s26 + $0xa8] sm:$0xff]  ;;  %v349_v11 = vld [vmem:[%s605_s26 + $0xb0] sm:$0xff]  ;;  %v350_v12 = vld [vmem:[%s605_s26 + $0xb8] sm:$0xff] }
  0x1e   : > { %431 = vst.msk [vmem:[%s641_s5 + $0x38] sm:$0xff] %vm423_vm0, %v398_v5  ;;  %v372_v29 = vadd.f32 %v340_v14, %v308_v16  ;;  %v310_v31 = vadd.f32 %v610_v1, %v274_v18  ;;  %v402_v34 = vmax.f32 %v370_v23, 0.0  ;;  %v275_v36 = vmul.f32 %v591_v0, %v239_v19  ;;  %v247_v5 = vld [vmem:[%s599_s23 + $0xc0] sm:$0xff]  ;;  %v248_v6 = vld [vmem:[%s599_s23 + $0xc8] sm:$0xff]  ;;  %v249_v13 = vld [vmem:[%s599_s23 + $0xd0] sm:$0xff] }
  0x1f   : > { %432 = vst.msk [vmem:[%s641_s5 + $0x40] sm:$0xff] %vm423_vm0, %v399_v21  ;;  %v403_v35 = vmax.f32 %v371_v24, 0.0  ;;  %v276_v37 = vmul.f32 %v591_v0, %v240_v20  ;;  %v373_v40 = vadd.f32 %v341_v25, %v309_v30  ;;  %v277_v44 = vmul.f32 %v591_v0, %v241_v27  ;;  %v250_v18 = vld [vmem:[%s599_s23 + $0xd8] sm:$0xff]  ;;  %v251_v19 = vld [vmem:[%s599_s23 + $0xe0] sm:$0xff]  ;;  %v252_v24 = vld [vmem:[%s599_s23 + $0xe8] sm:$0xff] }
  0x20   : > { %433 = vst.msk [vmem:[%s641_s5 + $0x48] sm:$0xff] %vm423_vm0, %v400_v22  ;;  %v404_v39 = vmax.f32 %v372_v29, 0.0  ;;  %v374_v41 = vadd.f32 %v342_v26, %v310_v31  ;;  %v311_v45 = vadd.f32 %v610_v1, %v275_v36  ;;  %v278_v48 = vmul.f32 %v591_v0, %v242_v32  ;;  %v352_v29 = vld [vmem:[%s605_s26 + $0xc8] sm:$0xff]  ;;  %v253_v36 = vld [vmem:[%s599_s23 + $0xf0] sm:$0xff] }
  0x21   : > { %434 = vst.msk [vmem:[%s641_s5 + $0x50] sm:$0xff] %vm423_vm0, %v401_v28  ;;  %v312_v46 = vadd.f32 %v610_v1, %v276_v37  ;;  %v279_v49 = vmul.f32 %v591_v0, %v243_v33  ;;  %v405_v52 = vmax.f32 %v373_v40, 0.0  ;;  %v313_v54 = vadd.f32 %v610_v1, %v277_v44  ;;  %v351_v28 = vld [vmem:[%s605_s26 + $0xc0] sm:$0xff]  ;;  %v353_v33 = vld [vmem:[%s605_s26 + $0xd0] sm:$0xff]  ;;  %v254_v37 = vld [vmem:[%s599_s23 + $0xf8] sm:$0xff] }
  0x22   : > { %435 = vst.msk [vmem:[%s641_s5 + $0x58] sm:$0xff] %vm423_vm0, %v402_v34  ;;  %v406_v53 = vmax.f32 %v374_v41, 0.0  ;;  %v280_v57 = vmul.f32 %v591_v0, %v244_v38  ;;  %v375_v58 = vadd.f32 %v343_v42, %v311_v45  ;;  %v314_v60 = vadd.f32 %v610_v1, %v278_v48  ;;  %v354_v41 = vld [vmem:[%s605_s26 + $0xd8] sm:$0xff]  ;;  %v355_v42 = vld [vmem:[%s605_s26 + $0xe0] sm:$0xff]  ;;  %v356_v48 = vld [vmem:[%s605_s26 + $0xe8] sm:$0xff] }
  0x23   : > { %436 = vst.msk [vmem:[%s641_s5 + $0x60] sm:$0xff] %vm423_vm0, %v403_v35  ;;  %v376_v59 = vadd.f32 %v344_v43, %v312_v46  ;;  %v315_v61 = vadd.f32 %v610_v1, %v279_v49  ;;  %v377_v63 = vadd.f32 %v345_v47, %v313_v54  ;;  %v281_v3 = vmul.f32 %v591_v0, %v245_v50 }
  0x24   : > { %437 = vst.msk [vmem:[%s641_s5 + $0x68] sm:$0xff] %vm423_vm0, %v404_v39  ;;  %v316_v2 = vadd.f32 %v610_v1, %v280_v57  ;;  %v282_v4 = vmul.f32 %v591_v0, %v246_v51  ;;  %v407_v7 = vmax.f32 %v375_v58, 0.0  ;;  %v378_v9 = vadd.f32 %v346_v55, %v314_v60  ;;  %v357_v57 = vld [vmem:[%s605_s26 + $0xf0] sm:$0xff]  ;;  %v358_v58 = vld [vmem:[%s605_s26 + $0xf8] sm:$0xff] }
  0x25   : > { %438 = vst.msk [vmem:[%s641_s5 + $0x70] sm:$0xff] %vm423_vm0, %v405_v52  ;;  %v408_v8 = vmax.f32 %v376_v59, 0.0  ;;  %v379_v10 = vadd.f32 %v347_v56, %v315_v61  ;;  %v409_v14 = vmax.f32 %v377_v63, 0.0  ;;  %v317_v16 = vadd.f32 %v610_v1, %v281_v3 }
  0x26   : > { %439 = vst.msk [vmem:[%s641_s5 + $0x78] sm:$0xff] %vm423_vm0, %v406_v53  ;;  %v380_v15 = vadd.f32 %v348_v62, %v316_v2  ;;  %v318_v17 = vadd.f32 %v610_v1, %v282_v4  ;;  %v410_v20 = vmax.f32 %v378_v9, 0.0  ;;  %v283_v22 = vmul.f32 %v591_v0, %v247_v5 }
  0x27   : > { %440 = vst.msk [vmem:[%s641_s5 + $0x80] sm:$0xff] %vm423_vm0, %v407_v7  ;;  %v411_v21 = vmax.f32 %v379_v10, 0.0  ;;  %v284_v23 = vmul.f32 %v591_v0, %v248_v6  ;;  %v381_v26 = vadd.f32 %v349_v11, %v317_v16  ;;  %v285_v30 = vmul.f32 %v591_v0, %v249_v13 }
  0x28   : > { %441 = vst.msk [vmem:[%s641_s5 + $0x88] sm:$0xff] %vm423_vm0, %v408_v8  ;;  %v412_v25 = vmax.f32 %v380_v15, 0.0  ;;  %v382_v27 = vadd.f32 %v350_v12, %v318_v17  ;;  %v319_v31 = vadd.f32 %v610_v1, %v283_v22  ;;  %v286_v34 = vmul.f32 %v591_v0, %v250_v18 }
  0x29   : > { %442 = vst.msk [vmem:[%s641_s5 + $0x90] sm:$0xff] %vm423_vm0, %v409_v14  ;;  %v320_v32 = vadd.f32 %v610_v1, %v284_v23  ;;  %v287_v35 = vmul.f32 %v591_v0, %v251_v19  ;;  %v413_v38 = vmax.f32 %v381_v26, 0.0  ;;  %v321_v40 = vadd.f32 %v610_v1, %v285_v30 }
  0x2a   : > { %443 = vst.msk [vmem:[%s641_s5 + $0x98] sm:$0xff] %vm423_vm0, %v410_v20  ;;  %v414_v39 = vmax.f32 %v382_v27, 0.0  ;;  %v288_v43 = vmul.f32 %v591_v0, %v252_v24  ;;  %v383_v44 = vadd.f32 %v351_v28, %v319_v31  ;;  %v322_v46 = vadd.f32 %v610_v1, %v286_v34 }
  0x2b   : > { %444 = vst.msk [vmem:[%s641_s5 + $0xa0] sm:$0xff] %vm423_vm0, %v411_v21  ;;  %v384_v45 = vadd.f32 %v352_v29, %v320_v32  ;;  %v323_v47 = vadd.f32 %v610_v1, %v287_v35  ;;  %v385_v49 = vadd.f32 %v353_v33, %v321_v40  ;;  %v289_v51 = vmul.f32 %v591_v0, %v253_v36 }
  0x2c   : > { %445 = vst.msk [vmem:[%s641_s5 + $0xa8] sm:$0xff] %vm423_vm0, %v412_v25  ;;  %v324_v50 = vadd.f32 %v610_v1, %v288_v43  ;;  %v290_v52 = vmul.f32 %v591_v0, %v254_v37  ;;  %v415_v53 = vmax.f32 %v383_v44, 0.0  ;;  %v386_v55 = vadd.f32 %v354_v41, %v322_v46 }
  0x2d   : > { %446 = vst.msk [vmem:[%s641_s5 + $0xb0] sm:$0xff] %vm423_vm0, %v413_v38  ;;  %v416_v54 = vmax.f32 %v384_v45, 0.0  ;;  %v387_v56 = vadd.f32 %v355_v42, %v323_v47  ;;  %v417_v59 = vmax.f32 %v385_v49, 0.0  ;;  %v325_v0 = vadd.f32 %v610_v1, %v289_v51 }
  0x2e   : > { %447 = vst.msk [vmem:[%s641_s5 + $0xb8] sm:$0xff] %vm423_vm0, %v414_v39  ;;  %v388_v60 = vadd.f32 %v356_v48, %v324_v50  ;;  %v326_v61 = vadd.f32 %v610_v1, %v290_v52  ;;  %v418_v62 = vmax.f32 %v386_v55, 0.0 }
  0x2f   : > { %448 = vst.msk [vmem:[%s641_s5 + $0xc0] sm:$0xff] %vm423_vm0, %v415_v53  ;;  %v419_v63 = vmax.f32 %v387_v56, 0.0  ;;  %v389_v3 = vadd.f32 %v357_v57, %v325_v0 }
  0x30   : > { %449 = vst.msk [vmem:[%s641_s5 + $0xc8] sm:$0xff] %vm423_vm0, %v416_v54  ;;  %v420_v2 = vmax.f32 %v388_v60, 0.0  ;;  %v390_v4 = vadd.f32 %v358_v58, %v326_v61 }
  0x31   : > { %450 = vst.msk [vmem:[%s641_s5 + $0xd0] sm:$0xff] %vm423_vm0, %v417_v59  ;;  %v421_v5 = vmax.f32 %v389_v3, 0.0 }
  0x32   : > { %451 = vst.msk [vmem:[%s641_s5 + $0xd8] sm:$0xff] %vm423_vm0, %v418_v62  ;;  %v422_v6 = vmax.f32 %v390_v4, 0.0 }
  0x33   : > { %452 = vst.msk [vmem:[%s641_s5 + $0xe0] sm:$0xff] %vm423_vm0, %v419_v63 }
  0x34   : > { %453 = vst.msk [vmem:[%s641_s5 + $0xe8] sm:$0xff] %vm423_vm0, %v420_v2 }
  0x35   : > { %454 = vst.msk [vmem:[%s641_s5 + $0xf0] sm:$0xff] %vm423_vm0, %v421_v5 }
  0x36   : > { %455 = vst.msk [vmem:[%s641_s5 + $0xf8] sm:$0xff] %vm423_vm0, %v422_v6 }
  0x37 PF: > { %s14_s15 = sadd.s32 1, %s553_s15  }
  0x38   : > { %p11_p4 = scmp.ge.s32.totalorder %s14_s15, 4  }
  0x3a   :  { %13 = sbr.rel (!%p11_p4) target bundleno = 1 (0x1), region = 69 }

</bundles_post_ra>
